<compile_context>
chip_gen: v7x
topology: tpu7x:2x2x1
jax: 0.10.0
libtpu: 0.0.40
codegen_flags: <defaults>
</compile_context>

<pallas_src>
import jax
import jax.numpy as jnp
from jax.experimental import pallas as pl
from jax.experimental.pallas import tpu as pltpu


def _round_up(x, m):
    return ((x + m - 1) // m) * m


def _mlp_kernel(x_ref, w1_ref, b1_ref, o_ref):
    # Fused: linear1 -> relu -> linear1 -> sigmoid on one [tm, Hp] batch tile.
    x = x_ref[...]        # [tm, Hp]
    w1 = w1_ref[...]      # [Hp, Hp]  (resident across grid steps)
    b = b1_ref[...]       # [1, Hp]   (loaded once, reused for both adds)

    h = jnp.dot(x, w1, preferred_element_type=jnp.float32) + b
    h = jnp.maximum(h, 0.0)                                       # ReLU
    h2 = jnp.dot(h, w1, preferred_element_type=jnp.float32) + b   # linear1 again (per source)
    o_ref[...] = jax.nn.sigmoid(h2)                               # EUP exp + reciprocal


def neural_net1_forward(x, w1, b1, *, block_b=256, lane=128):
    """x: [B, F] f32, w1: [F, H] f32 (F == H), b1: [H] f32 -> [B, H] f32."""
    B, F = x.shape
    H = w1.shape[1]
    assert w1.shape[0] == F and F == H, "forward applies linear1 twice; needs F == H"

    # Pad the feature/hidden dim to a lane-dense multiple of 128.
    Hp = max(lane, _round_up(H, lane))
    # Batch tile: multiple of 8 sublanes, capped at block_b.
    tm = min(block_b, _round_up(B, 8))
    Bp = _round_up(B, tm)

    x_p = jnp.zeros((Bp, Hp), jnp.float32).at[:B, :F].set(x.astype(jnp.float32))
    w1_p = jnp.zeros((Hp, Hp), jnp.float32).at[:F, :H].set(w1.astype(jnp.float32))
    b1_p = jnp.zeros((1, Hp), jnp.float32).at[0, :H].set(b1.astype(jnp.float32))

    out = pl.pallas_call(
        _mlp_kernel,
        out_shape=jax.ShapeDtypeStruct((Bp, Hp), jnp.float32),
        grid_spec=pltpu.PrefetchScalarGridSpec(
            num_scalar_prefetch=0,
            grid=(Bp // tm,),
            in_specs=[
                pl.BlockSpec((tm, Hp), lambda i: (i, 0)),   # batch tile, pipelined
                pl.BlockSpec((Hp, Hp), lambda i: (0, 0)),   # weight, resident
                pl.BlockSpec((1, Hp), lambda i: (0, 0)),    # bias, resident
            ],
            out_specs=pl.BlockSpec((tm, Hp), lambda i: (i, 0)),
        ),
        compiler_params=pltpu.CompilerParams(
            dimension_semantics=("parallel",),
        ),
    )(x_p, w1_p, b1_p)

    return out[:B, :H]


def init_params(key, input_size, hidden_size):
    """Deterministic PyTorch-style Linear init: U(-1/sqrt(fan_in), 1/sqrt(fan_in))."""
    k1, k2, k3, k4 = jax.random.split(key, 4)
    bound1 = 1.0 / jnp.sqrt(input_size)
    # linear1: PyTorch weight is [H, F]; we store transposed [F, H].
    w1 = jax.random.uniform(k1, (input_size, hidden_size), jnp.float32,
                            minval=-bound1, maxval=bound1)
    b1 = jax.random.uniform(k2, (hidden_size,), jnp.float32,
                            minval=-bound1, maxval=bound1)
    # linear2 exists in __init__ but is unused in forward (kept for fidelity).
    bound2 = 1.0 / jnp.sqrt(hidden_size)
    w2 = jax.random.uniform(k3, (hidden_size, 1), jnp.float32,
                            minval=-bound2, maxval=bound2)
    b2 = jax.random.uniform(k4, (1,), jnp.float32, minval=-bound2, maxval=bound2)
    return w1, b1, w2, b2


def _reference(x, w1, b1):
    h = jnp.maximum(x @ w1 + b1, 0.0)
    return jax.nn.sigmoid(h @ w1 + b1)


if __name__ == "__main__":
    key = jax.random.PRNGKey(0)
    INPUT_SIZE = 32
    HIDDEN_SIZE = 32  # must equal INPUT_SIZE because forward applies linear1 twice

    kx, kp, kx2 = jax.random.split(key, 3)
    w1, b1, w2, b2 = init_params(kp, INPUT_SIZE, HIDDEN_SIZE)

    # Small-batch check (single grid step).
    B = 8
    x = jax.random.normal(kx, (B, INPUT_SIZE), jnp.float32)
    y = neural_net1_forward(x, w1, b1)
    jax.block_until_ready(y)
    assert y.shape == (B, HIDDEN_SIZE)
    assert jnp.allclose(y, _reference(x, w1, b1), atol=1e-5, rtol=1e-5)

    # Multi-step grid check (exercises batch tiling + padding path).
    B2 = 300
    x2 = jax.random.normal(kx2, (B2, INPUT_SIZE), jnp.float32)
    y2 = neural_net1_forward(x2, w1, b1)
    jax.block_until_ready(y2)
    assert y2.shape == (B2, HIDDEN_SIZE)
    assert jnp.allclose(y2, _reference(x2, w1, b1), atol=1e-5, rtol=1e-5)

    print("KERNEL_OK")
</pallas_src>

<mosaic_0001>
module attributes {stable_mosaic.version = 11 : i64} {
  func.func @_mlp_kernel(%arg0: i32, %arg1: memref<8x128xf32, #tpu.memory_space<vmem>>, %arg2: memref<128x128xf32, #tpu.memory_space<vmem>>, %arg3: memref<1x128xf32, #tpu.memory_space<vmem>>, %arg4: memref<8x128xf32, #tpu.memory_space<vmem>>) attributes {dimension_semantics = [#tpu.dimension_semantics<parallel>], iteration_bounds = array<i64: 1>, scalar_prefetch = 0 : i64, scratch_operands = 0 : i64, tpu.core_type = #tpu.core_type<tc>, window_params = [{transform_indices = @transform_0, window_bounds = array<i64: 8, 128>}, {pipeline_mode = #tpu.pipeline_mode<synchronous>, transform_indices = @transform_1, window_bounds = array<i64: 128, 128>}, {pipeline_mode = #tpu.pipeline_mode<synchronous>, transform_indices = @transform_2, window_bounds = array<i64: 1, 128>}, {transform_indices = @transform_3, window_bounds = array<i64: 8, 128>}]} {
    %c0 = arith.constant 0 : index
    %c0_0 = arith.constant 0 : index
    %0 = vector.load %arg1[%c0, %c0_0] : memref<8x128xf32, #tpu.memory_space<vmem>>, vector<8x128xf32>
    %c0_1 = arith.constant 0 : index
    %c0_2 = arith.constant 0 : index
    %1 = vector.load %arg2[%c0_1, %c0_2] : memref<128x128xf32, #tpu.memory_space<vmem>>, vector<128x128xf32>
    %c0_3 = arith.constant 0 : index
    %c0_4 = arith.constant 0 : index
    %2 = vector.load %arg3[%c0_3, %c0_4] : memref<1x128xf32, #tpu.memory_space<vmem>>, vector<1x128xf32>
    %cst = arith.constant dense<0.000000e+00> : vector<8x128xf32>
    %3 = tpu.matmul %0, %1, %cst {dimension_numbers = #tpu.dot_dimension_numbers<[1], [0], [0], [1], [0, 0, 1, 1], [], []>} : vector<8x128xf32>, vector<128x128xf32>, vector<8x128xf32> -> vector<8x128xf32>
    %4 = vector.broadcast %2 : vector<1x128xf32> to vector<8x128xf32>
    %5 = arith.addf %3, %4 : vector<8x128xf32>
    %cst_5 = arith.constant 0.000000e+00 : f32
    %6 = vector.broadcast %cst_5 : f32 to vector<8x128xf32>
    %7 = arith.maximumf %5, %6 : vector<8x128xf32>
    %cst_6 = arith.constant dense<0.000000e+00> : vector<8x128xf32>
    %8 = tpu.matmul %7, %1, %cst_6 {dimension_numbers = #tpu.dot_dimension_numbers<[1], [0], [0], [1], [0, 0, 1, 1], [], []>} : vector<8x128xf32>, vector<128x128xf32>, vector<8x128xf32> -> vector<8x128xf32>
    %9 = vector.broadcast %2 : vector<1x128xf32> to vector<8x128xf32>
    %10 = arith.addf %8, %9 : vector<8x128xf32>
    %11 = arith.negf %10 : vector<8x128xf32>
    %12 = math.exp %11 : vector<8x128xf32>
    %cst_7 = arith.constant 1.000000e+00 : f32
    %13 = vector.broadcast %cst_7 : f32 to vector<8x128xf32>
    %14 = arith.addf %13, %12 : vector<8x128xf32>
    %15 = arith.divf %13, %14 : vector<8x128xf32>
    %c0_8 = arith.constant 0 : index
    %c0_9 = arith.constant 0 : index
    %16 = vector.load %arg4[%c0_8, %c0_9] : memref<8x128xf32, #tpu.memory_space<vmem>>, vector<8x128xf32>
    tpu.vector_store %arg4[%c0_8, %c0_9], %15 {strides = array<i32>} : memref<8x128xf32, #tpu.memory_space<vmem>>, vector<8x128xf32>,
    return
  }
  func.func @transform_0(%arg0: i32) -> (i32, i32) {
    %c0_i32 = arith.constant 0 : i32
    %c0_i32_0 = arith.constant 0 : i32
    return %arg0, %c0_i32 : i32, i32
  }
  func.func @transform_1(%arg0: i32) -> (i32, i32) {
    %c0_i32 = arith.constant 0 : i32
    %c0_i32_0 = arith.constant 0 : i32
    %c0_i32_1 = arith.constant 0 : i32
    return %c0_i32, %c0_i32_0 : i32, i32
  }
  func.func @transform_2(%arg0: i32) -> (i32, i32) {
    %c0_i32 = arith.constant 0 : i32
    %c0_i32_0 = arith.constant 0 : i32
    %c0_i32_1 = arith.constant 0 : i32
    return %c0_i32, %c0_i32_0 : i32, i32
  }
  func.func @transform_3(%arg0: i32) -> (i32, i32) {
    %c0_i32 = arith.constant 0 : i32
    %c0_i32_0 = arith.constant 0 : i32
    return %arg0, %c0_i32 : i32, i32
  }
}

</mosaic_0001>

<bundles_post_ra>
// kernel: tpu_custom_call.1
= control target key start
LH: loop header
LB: loop body
LE: loop exit
PB: predicated region body
PF: predicated region fallthrough
CT: control target
= control target key end

     0   :  { %8 = vsyncpa [#allocation3], 0  ;;  %s541_s0 = inlined_call_operand.hbm [shape: f32[8,128], index: 0, kind: input, shape index: {}]   ;;  %s542_s1 = inlined_call_operand.hbm [shape: f32[128,128], index: 1, kind: input, shape index: {}]   ;;  %s543_s2 = inlined_call_operand.vmem [shape: f32[1,128], index: 2, kind: input, shape index: {}]   ;;  %s544_s3 = inlined_call_operand.hbm [shape: f32[8,128], index: 3, kind: output, shape index: {}]  }
   0x1   :  { %9 = vsyncpa [#allocation6], 0 }
   0x2   :  { %10 = vsyncpa [#allocation4], 0  ;;  %s467_s12 = smov [#allocation2]   ;;  %s468_s14 = smov [#allocation5]  }
   0x3   :  { %s17_s13 = sshll.u32 %s467_s12, 4  ;;  %s26_s15 = sshll.u32 %s468_s14, 4  ;;  %s18_s13 = int_to_ptr.vmem [resolvable:$true] %s17_s13  ;;  %s495_s15 = int_to_ptr.vmem [resolvable:$true] %s26_s15 }
   0x4   :  { %s395_s18 = scalar_lea.hbm %s541_s0, 128 }
   0x5   :  { %p396_p0 = scmp.ne.s32.totalorder %s541_s0, %s395_s18  ;;  %p399_p1 = scmp.lt.u32.totalorder %s395_s18, %s541_s0 }
   0x7   :  { %p401_p2 = pnand %p399_p1, %p396_p0 }
   0x9   :  { %404 = shalt.err (!%p401_p2)
}
   0xa   :  { %s405_s23 = scalar_lea.vmem %s18_s13, 128  ;;  %p410_p4 = scmp.lt.s32.totalorder %s18_s13, %s18_s13 }
   0xb   :  { %p406_p3 = scmp.ne.s32.totalorder %s18_s13, %s405_s23  ;;  %p411_p5 = scmp.lt.s32.totalorder %s405_s23, %s405_s23 }
   0xd   :  { %p412_p6 = por %p411_p5, %p410_p4 }
   0xf   :  { %p413_p7 = pnand %p412_p6, %p406_p3 }
  0x11   :  { %416 = shalt.err (!%p413_p7)
}
  0x12   :  { %20 = dma.hbm_to_vmem [thread:$0]  %s541_s0, 128, %s18_s13, [#allocation3]  }
  0x13   :  { %s417_s28 = scalar_lea.hbm %s542_s1, 2048 }
  0x14   :  { %p418_p8 = scmp.ne.s32.totalorder %s542_s1, %s417_s28  ;;  %p421_p9 = scmp.lt.u32.totalorder %s417_s28, %s542_s1 }
  0x16   :  { %p423_p10 = pnand %p421_p9, %p418_p8 }
  0x18   :  { %426 = shalt.err (!%p423_p10)
}
  0x19   :  { %s427_s6 = scalar_lea.vmem %s495_s15, 2048  ;;  %p432_p12 = scmp.lt.s32.totalorder %s495_s15, %s495_s15 }
  0x1a   :  { %p428_p11 = scmp.ne.s32.totalorder %s495_s15, %s427_s6  ;;  %p433_p13 = scmp.lt.s32.totalorder %s427_s6, %s427_s6 }
  0x1c   :  { %p434_p0 = por %p433_p13, %p432_p12 }
  0x1e   :  { %p435_p1 = pnand %p434_p0, %p428_p11 }
  0x20   :  { %438 = shalt.err (!%p435_p1)
}
  0x21   :  { %s469_s0 = smov 128   ;;  %s470_s7 = smov 8  }
  0x22   :  { %32 = dma.hbm_to_vmem [thread:$0]  %s542_s1, 2048, %s495_s15, [#allocation6], %s469_s0, %s469_s0, %s470_s7  }
  0x23   :  { %461 = dma.done.wait [#allocation3], 128  }
  0x24   :  { %462 = vsyncadd [#allocation3], 4294967168 }
  0x25   :  { %463 = dma.done.wait [#allocation6], 2048  }
  0x26   :  { %464 = vsyncadd [#allocation6], 4294965248  ;;  %v471_v0 = vmov 0.0|0.0   ;;  %vm472_vm0 = vmmov 0   ;;  %v473_v1 = vmov 0.0   ;;  %v42_v2 = vld [vmem:[#allocation5] sm:$0xff] }
  0x27   :  { %335 = vmatprep.subr.bf16.mxu0 %v471_v0  ;;  %297 = vmatprep.mubr.msk.f32.mxu0 %vm472_vm0, %v473_v1  ;;  %v43_v3 = vld [vmem:[#allocation5 + $0x8] sm:$0xff]  ;;  %v44_v4 = vld [vmem:[#allocation5 + $0x10] sm:$0xff]  ;;  %v45_v6 = vld [vmem:[#allocation5 + $0x18] sm:$0xff]  ;;  %s474_s11 = smov [#allocation7]  }
  0x28   :  { %359 = vmatprep.subr.bf16.mxu1 %v471_v0  ;;  %332 = vmatprep.mubr.msk.f32.mxu1 %vm472_vm0, %v473_v1  ;;  %v336_v5 = vpack.c.bf16 %v43_v3, %v42_v2  ;;  %v339_v7 = vpack.c.bf16 %v45_v6, %v44_v4  ;;  %v46_v8 = vld [vmem:[#allocation5 + $0x20] sm:$0xff]  ;;  %v47_v9 = vld [vmem:[#allocation5 + $0x28] sm:$0xff]  ;;  %v48_v11 = vld [vmem:[#allocation5 + $0x30] sm:$0xff]  ;;  %s219_s12 = sshll.u32 %s474_s11, 4  ;;  %s220_s12 = int_to_ptr.vmem [resolvable:$true] %s219_s12 }
  0x29   :  { %v342_v10 = vpack.c.bf16 %v47_v9, %v46_v8  ;;  %v49_v12 = vld [vmem:[#allocation5 + $0x38] sm:$0xff]  ;;  %v50_v14 = vld [vmem:[#allocation5 + $0x40] sm:$0xff]  ;;  %v51_v15 = vld [vmem:[#allocation5 + $0x48] sm:$0xff]  ;;  %s439_s13 = scalar_lea.vmem %s220_s12, 128  ;;  %p444_p3 = scmp.lt.s32.totalorder %s220_s12, %s220_s12 }
  0x2a   :  { %337 = vmatpush3.bf16.msra.mxu0 %v336_v5  ;;  %361 = vmatpush3.bf16.msra.mxu1 %v336_v5  ;;  %v345_v13 = vpack.c.bf16 %v49_v12, %v48_v11  ;;  %v348_v16 = vpack.c.bf16 %v51_v15, %v50_v14  ;;  %v52_v17 = vld [vmem:[#allocation5 + $0x50] sm:$0xff]  ;;  %v53_v18 = vld [vmem:[#allocation5 + $0x58] sm:$0xff]  ;;  %v54_v20 = vld [vmem:[#allocation5 + $0x60] sm:$0xff]  ;;  %p440_p2 = scmp.ne.s32.totalorder %s220_s12, %s439_s13  ;;  %p445_p4 = scmp.lt.s32.totalorder %s439_s13, %s439_s13 }
  0x2b   :  { %338 = vmatprep.subr.bf16.mxu0 %v471_v0  ;;  %362 = vmatprep.subr.bf16.mxu1 %v471_v0  ;;  %v351_v19 = vpack.c.bf16 %v53_v18, %v52_v17  ;;  %v55_v21 = vld [vmem:[#allocation5 + $0x68] sm:$0xff]  ;;  %v56_v23 = vld [vmem:[#allocation5 + $0x70] sm:$0xff]  ;;  %v57_v24 = vld [vmem:[#allocation5 + $0x78] sm:$0xff] }
  0x2c   :  { %v354_v22 = vpack.c.bf16 %v55_v21, %v54_v20  ;;  %v357_v25 = vpack.c.bf16 %v57_v24, %v56_v23  ;;  %v41_v26 = vld [vmem:[#allocation2] sm:$0xff]  ;;  %p446_p5 = por %p445_p4, %p444_p3 }
  0x2d   :  { %v229_v27 = vld [vmem:[%s543_s2] ss:$0 sm:$0xff] }
  0x2e   :  { %340 = vmatpush3.bf16.msra.mxu0 %v339_v7  ;;  %364 = vmatpush3.bf16.msra.mxu1 %v339_v7  ;;  %p447_p6 = pnand %p446_p5, %p440_p2 }
  0x2f   :  { %341 = vmatprep.subr.bf16.mxu0 %v471_v0  ;;  %365 = vmatprep.subr.bf16.mxu1 %v471_v0 }
  0x32   :  { %343 = vmatpush3.bf16.msra.mxu0 %v342_v10  ;;  %367 = vmatpush3.bf16.msra.mxu1 %v342_v10 }
  0x33   :  { %344 = vmatprep.subr.bf16.mxu0 %v471_v0  ;;  %368 = vmatprep.subr.bf16.mxu1 %v471_v0 }
  0x36   :  { %346 = vmatpush3.bf16.msra.mxu0 %v345_v13  ;;  %370 = vmatpush3.bf16.msra.mxu1 %v345_v13 }
  0x37   :  { %347 = vmatprep.subr.bf16.mxu0 %v471_v0  ;;  %371 = vmatprep.subr.bf16.mxu1 %v471_v0 }
  0x3a   :  { %349 = vmatpush3.bf16.msra.mxu0 %v348_v16  ;;  %373 = vmatpush3.bf16.msra.mxu1 %v348_v16 }
  0x3b   :  { %350 = vmatprep.subr.bf16.mxu0 %v471_v0  ;;  %374 = vmatprep.subr.bf16.mxu1 %v471_v0 }
  0x3e   :  { %352 = vmatpush3.bf16.msra.mxu0 %v351_v19  ;;  %376 = vmatpush3.bf16.msra.mxu1 %v351_v19 }
  0x3f   :  { %353 = vmatprep.subr.bf16.mxu0 %v471_v0  ;;  %377 = vmatprep.subr.bf16.mxu1 %v471_v0 }
  0x42   :  { %355 = vmatpush3.bf16.msra.mxu0 %v354_v22  ;;  %379 = vmatpush3.bf16.msra.mxu1 %v354_v22 }
  0x43   :  { %356 = vmatprep.subr.bf16.mxu0 %v471_v0  ;;  %380 = vmatprep.subr.bf16.mxu1 %v471_v0 }
  0x46   :  { %358 = vmatpush3.bf16.msra.mxu0 %v357_v25  ;;  %382 = vmatpush3.bf16.msra.mxu1 %v357_v25 }
  0x49   :  { %298 = vmatmul.mubr.f32.vlgmr.msra.gmra.mrb[0].mxu0 %v41_v26 }
 0x11c   :  { %v131_v28 = vpop.f32.mrb[0].mxu0 }
 0x11d   :  { %v132_v29 = vadd.f32 %v229_v27, %v131_v28  ;;  %v299_v30 = vpop.f32.mrb[1].mxu0 }
 0x11f   :  { %v135_v31 = vmax.f32 %v132_v29, 0.0 }
 0x121   :  { %333 = vmatmul.mubr.f32.vlgmr.msra.gmra.mrb[0].mxu1 %v135_v31 }
 0x1f4   :  { %v202_v32 = vpop.f32.mrb[0].mxu1 }
 0x1f5   :  { %v203_v33 = vadd.f32 %v229_v27, %v202_v32  ;;  %v334_v34 = vpop.f32.mrb[1].mxu1 }
 0x1f7   :  { %v230_v35 = vmul.f32 -1.442695, %v203_v33 }
 0x1f9   :  { %391 = vpow2.f32 %v230_v35 }
 0x203   :  { %v392_v36 = vpop.eup %391 }
 0x204   :  { %v209_v37 = vadd.f32 1.0, %v392_v36 }
 0x206   :  { %393 = vrcp.f32 %v209_v37 }
 0x210   :  { %v394_v38 = vpop.eup %393 }
 0x211   :  { %212 = vst [vmem:[#allocation7] sm:$0xff] %v394_v38 }
 0x212   :  { %450 = shalt.err (!%p447_p6)
}
 0x213   :  { %s451_s15 = scalar_lea.hbm %s544_s3, 128 }
 0x214   :  { %p452_p7 = scmp.ne.s32.totalorder %s544_s3, %s451_s15  ;;  %p455_p8 = scmp.lt.u32.totalorder %s451_s15, %s544_s3 }
 0x216   :  { %p457_p9 = pnand %p455_p8, %p452_p7 }
 0x218   :  { %460 = shalt.err (!%p457_p9)
}
 0x219   :  { %222 = dma.vmem_to_hbm [thread:$0]  %s220_s12, 128, %s544_s3, [#allocation4]  }
 0x21a   :  { %465 = dma.done.wait [#allocation4], 128  }
 0x21b   :  { %466 = vsyncadd [#allocation4], 4294967168 }
 0x21c   :  { %226 = vsyncpa [#allocation3], 1 }
 0x21d   :  { %227 = vsyncpa [#allocation6], 1 }
 0x21e   :  { %228 = vsyncpa [#allocation4], 1 }

</bundles_post_ra>
